<compile_context>
chip_gen: v7x
topology: tpu7x:2x2x1
jax: 0.10.0
libtpu: 0.0.40
codegen_flags: <defaults>
</compile_context>

<pallas_src>
import functools

import jax
import jax.numpy as jnp
from jax import lax
from jax.experimental import pallas as pl
from jax.experimental.pallas import tpu as pltpu

_EPS = 1e-12            # torch F.normalize / clamp_min eps
_EPS2 = _EPS * _EPS


def _smooth_l1(x, y):
    # torch.nn.functional.smooth_l1_loss (beta=1.0), elementwise, select-free:
    #   |d| <  1: m=|d| -> m*(|d|-0.5m) = 0.5 d^2
    #   |d| >= 1: m=1   -> |d| - 0.5
    ad = jnp.abs(x - y)
    m = jnp.minimum(ad, 1.0)
    return m * (ad - 0.5 * m)


# --------------------- kernel A: L2-normalize + Gram matrices -----------------
def _gram_kernel(t_ref, s_ref, gt_ref, gs_ref):
    t = t_ref[...].astype(jnp.float32)
    s = s_ref[...].astype(jnp.float32)

    # F.normalize(x, dim=1) == x * rsqrt(max(|x|^2, eps^2))
    def l2norm(e):
        ss = jnp.sum(e * e, axis=-1, keepdims=True)
        return e * lax.rsqrt(jnp.maximum(ss, _EPS2))

    tn = l2norm(t)
    sn = l2norm(s)

    gt_ref[...] = jnp.einsum("nd,md->nm", tn, tn,
                             preferred_element_type=jnp.float32)
    gs_ref[...] = jnp.einsum("nd,md->nm", sn, sn,
                             preferred_element_type=jnp.float32)


# --------- kernel B: angle-branch partials + distance branch (block 0) --------
def _angle_dist_kernel(gt_ref, gs_ref, ang_ref, dist_ref, *, blk, n, unroll):
    pid = pl.program_id(0)
    i0 = pid * blk

    gt = gt_ref[...]          # (N, N) f32, resident across the whole grid
    gs = gs_ref[...]

    # ---- distance branch: O(N^2), computed once (block 0) on resident Grams.
    dist_ref[0, 0] = 0.0

    @pl.when(pid == 0)
    def _():
        row = lax.broadcasted_iota(jnp.int32, (n, n), 0)
        col = lax.broadcasted_iota(jnp.int32, (n, n), 1)
        offdiag = row != col

        def pdist(g):
            # unit-norm rows => ||e_i - e_j||^2 == 2 - 2 G[i,j]
            d = jnp.sqrt(jnp.maximum(2.0 - 2.0 * g, _EPS))
            return jnp.where(offdiag, d, 0.0)

        td = pdist(gt)
        sd = pdist(gs)
        # "positive mean": every off-diagonal entry is >= sqrt(eps) > 0 and the
        # diagonal is exactly 0, so the count is the constant N*(N-1).
        inv_cnt = 1.0 / float(max(n * (n - 1), 1))
        tdn = td * (1.0 / (jnp.sum(td) * inv_cnt))      # one scalar divide each
        sdn = sd * (1.0 / (jnp.sum(sd) * inv_cnt))
        dist_ref[0, 0] = jnp.sum(_smooth_l1(sdn, tdn)) * (1.0 / float(n * n))

    # ---- angle branch: blk rank-2 (N,N) planes per grid step.
    col_1n = lax.broadcasted_iota(jnp.int32, (1, n), 1)   # lane ids   (1, N)
    row_n1 = lax.broadcasted_iota(jnp.int32, (n, 1), 0)   # sublane ids (N, 1)

    def body(r, acc):
        i = i0 + r
        isafe = jnp.minimum(i, n - 1)            # clamp; masked via `valid`
        valid = (i < n).astype(jnp.float32)
        sel_r = col_1n == isafe                  # (1, N): k == i
        sel_c = row_n1 == isafe                  # (N, 1): j == i
        onehot = sel_c.astype(jnp.float32)       # (N, 1) one-hot column i

        def plane(g_full, g_ref):
            g_row = g_ref[pl.ds(isafe, 1), :]                  # (1, N) = G[i, :]
            # G[:, i] via an MXU one-hot matvec — keeps the O(N^3) hot loop off
            # the saturated VALU/XLU slots (MXU is otherwise idle here).
            g_col = jnp.dot(g_full, onehot,
                            preferred_element_type=jnp.float32)  # (N, 1)
            # 1/max(||e_j - e_i||, eps) == rsqrt(max(2 - 2 G[i,j], eps^2)),
            # zeroed at j == i (F.normalize of the zero difference vector).
            # `valid` zeroes the whole plane for padded rows of the last block.
            inv_r = jnp.where(
                sel_r, 0.0,
                lax.rsqrt(jnp.maximum(2.0 - 2.0 * g_row, _EPS2))) * valid
            inv_c = jnp.where(
                sel_c, 0.0,
                lax.rsqrt(jnp.maximum(2.0 - 2.0 * g_col, _EPS2)))
            # (e_j-e_i)·(e_k-e_i) = G[j,k] - G[j,i] - G[i,k] + G[i,i];
            # G[i,i] == 1 for unit-norm rows, folded into the O(N) row term.
            num = g_full - g_col - (g_row - 1.0)
            return num * inv_c * inv_r

        ta = plane(gt, gt_ref)
        sa = plane(gs, gs_ref)
        # Elementwise accumulate; the cross-lane reduce happens once per block.
        return acc + _smooth_l1(sa, ta)

    acc = lax.fori_loop(0, blk, body, jnp.zeros((n, n), jnp.float32),
                        unroll=unroll)
    ang_ref[0, 0] = jnp.sum(acc)


# --------------------------------- wrapper ------------------------------------
def _cdiv(a, b):
    return (a + b - 1) // b


def _vmem_cap_bytes():
    # ~75% of the physical per-core VMEM (headroom for compiler scratch,
    # semaphores, pipeline buffers).  Fallback: the smallest current
    # generation (v7x, 64 MiB).
    try:
        cap = int(pltpu.get_tpu_info().vmem_capacity_bytes)
    except Exception:
        cap = 64 << 20
    return max((cap * 3) // 4, 32 << 20)


def _call_angle_dist(gt, gs, *, blk, unroll, num_blocks, vmem_b, single_buffer):
    n = gt.shape[0]
    if single_buffer:
        # Constant index_map -> double buffering buys nothing; single-buffering
        # halves the resident (N,N) input footprint (matters on v7x, 64 MiB).
        def in_spec():
            return pl.BlockSpec((n, n), lambda i: (0, 0),
                                pipeline_mode=pl.Buffered(1))
    else:
        def in_spec():
            return pl.BlockSpec((n, n), lambda i: (0, 0))

    return pl.pallas_call(
        functools.partial(_angle_dist_kernel, blk=blk, n=n, unroll=unroll),
        out_shape=(
            jax.ShapeDtypeStruct((num_blocks, 1), jnp.float32),  # angle partials
            jax.ShapeDtypeStruct((num_blocks, 1), jnp.float32),  # distance (slot 0)
        ),
        grid=(num_blocks,),
        in_specs=[in_spec(), in_spec()],
        out_specs=(
            pl.BlockSpec((1, 1), lambda i: (i, 0),
                         memory_space=pltpu.MemorySpace.SMEM),
            pl.BlockSpec((1, 1), lambda i: (i, 0),
                         memory_space=pltpu.MemorySpace.SMEM),
        ),
        compiler_params=pltpu.CompilerParams(
            dimension_semantics=("parallel",), vmem_limit_bytes=vmem_b),
    )(gt, gs)


def rkd_loss(teacher_feature, student_feature, *, w_rkd_d=1.0, w_rkd_a=2.0):
    """Pallas implementation of RKD.forward (returns a scalar loss)."""
    N, D = teacher_feature.shape
    assert student_feature.shape == (N, D)

    # Row-block size for the angle branch: num_blocks >= 2 feeds both v7x
    # TensorCores via the ("parallel",) axis; bigger blocks for larger N
    # amortize per-grid-step overhead on single-TC parts (v5e/v6e).
    if N >= 64:
        blk, unroll = 32, 4            # blk % unroll == 0
    elif N >= 2:
        blk, unroll = _cdiv(N, 2), True
    else:
        blk, unroll = 1, True
    num_blocks = _cdiv(N, blk)

    vmem_cap = _vmem_cap_bytes()
    vmem_a = min(max(8 * N * D * 4 + 8 * N * N * 4, 32 << 20), vmem_cap)
    vmem_b = min(max(12 * N * N * 4, 32 << 20), vmem_cap)

    # Kernel A: L2-normalize + Gram matrices only (small, single block).
    gt, gs = pl.pallas_call(
        _gram_kernel,
        out_shape=(
            jax.ShapeDtypeStruct((N, N), jnp.float32),
            jax.ShapeDtypeStruct((N, N), jnp.float32),
        ),
        grid=(1,),
        in_specs=[
            pl.BlockSpec((N, D), lambda i: (0, 0)),
            pl.BlockSpec((N, D), lambda i: (0, 0)),
        ],
        out_specs=(
            pl.BlockSpec((N, N), lambda i: (0, 0)),
            pl.BlockSpec((N, N), lambda i: (0, 0)),
        ),
        compiler_params=pltpu.CompilerParams(
            dimension_semantics=("arbitrary",), vmem_limit_bytes=vmem_a),
    )(teacher_feature, student_feature)

    # Kernel B: angle-branch partials (+ distance branch at block 0).
    try:
        ang, dist = _call_angle_dist(gt, gs, blk=blk, unroll=unroll,
                                     num_blocks=num_blocks, vmem_b=vmem_b,
                                     single_buffer=True)
    except Exception:
        # pl.Buffered / pipeline_mode not supported by this JAX build — fall
        # back to the default double-buffered pipeline (identical semantics).
        ang, dist = _call_angle_dist(gt, gs, blk=blk, unroll=unroll,
                                     num_blocks=num_blocks, vmem_b=vmem_b,
                                     single_buffer=False)

    loss_distance = dist[0, 0]
    loss_angle = jnp.sum(ang) * (1.0 / float(N) ** 3)
    return w_rkd_d * loss_distance + w_rkd_a * loss_angle


# ----------------------------- pure-JAX reference ----------------------------
def rkd_ref(t, s, *, w_rkd_d=1.0, w_rkd_a=2.0):
    """Mirrors the PyTorch RKD.forward exactly (f32, difference-based angles)."""
    def l2norm(e, axis):
        nrm = jnp.sqrt(jnp.sum(e * e, axis=axis, keepdims=True))
        return e / jnp.maximum(nrm, _EPS)

    t = l2norm(t.astype(jnp.float32), 1)
    s = l2norm(s.astype(jnp.float32), 1)
    n = t.shape[0]
    eye = jnp.eye(n, dtype=bool)

    def pdist(e):
        sq = jnp.sum(e * e, axis=1)
        prod = e @ e.T
        res = jnp.maximum(sq[:, None] + sq[None, :] - 2.0 * prod, _EPS)
        return jnp.where(eye, 0.0, jnp.sqrt(res))

    def pos_mean(d):
        m = (d > 0.0).astype(jnp.float32)
        return jnp.sum(d * m) / jnp.maximum(jnp.sum(m), 1.0)

    t_d = pdist(t); s_d = pdist(s)
    t_dn = t_d / pos_mean(t_d); s_dn = s_d / pos_mean(s_d)
    loss_distance = jnp.mean(_smooth_l1(s_dn, t_dn))

    def angle(e):
        diff = e[None, :, :] - e[:, None, :]
        dn = l2norm(diff, 2)
        return jnp.einsum("ijd,ikd->ijk", dn, dn)

    loss_angle = jnp.mean(_smooth_l1(angle(s), angle(t)))
    return w_rkd_d * loss_distance + w_rkd_a * loss_angle


if __name__ == "__main__":
    # RKD.__init__ has no learnable parameters; args only carry the weights.
    N, D = 8, 32                      # small (batch, feature_dim)
    key = jax.random.PRNGKey(0)
    kt, ks = jax.random.split(key)
    teacher = jax.random.normal(kt, (N, D), dtype=jnp.float32)
    student = jax.random.normal(ks, (N, D), dtype=jnp.float32)

    w_rkd_d, w_rkd_a = 1.0, 2.0       # args.w_rkd_d / args.w_rkd_a

    loss = rkd_loss(teacher, student, w_rkd_d=w_rkd_d, w_rkd_a=w_rkd_a)
    loss = jax.block_until_ready(loss)

    ref = rkd_ref(teacher, student, w_rkd_d=w_rkd_d, w_rkd_a=w_rkd_a)
    assert jnp.allclose(loss, ref, rtol=1e-2, atol=1e-3), (loss, ref)

    print("KERNEL_OK")
</pallas_src>

<mosaic_0001>
module attributes {stable_mosaic.version = 11 : i64} {
  func.func @_gram_kernel(%arg0: i32, %arg1: memref<8x32xf32, #tpu.memory_space<vmem>>, %arg2: memref<8x32xf32, #tpu.memory_space<vmem>>, %arg3: memref<8x8xf32, #tpu.memory_space<vmem>>, %arg4: memref<8x8xf32, #tpu.memory_space<vmem>>) attributes {dimension_semantics = [#tpu.dimension_semantics<arbitrary>], iteration_bounds = array<i64: 1>, scalar_prefetch = 0 : i64, scratch_operands = 0 : i64, tpu.core_type = #tpu.core_type<tc>, window_params = [{pipeline_mode = #tpu.pipeline_mode<synchronous>, transform_indices = @transform_0, window_bounds = array<i64: 8, 32>}, {pipeline_mode = #tpu.pipeline_mode<synchronous>, transform_indices = @transform_1, window_bounds = array<i64: 8, 32>}, {pipeline_mode = #tpu.pipeline_mode<synchronous>, transform_indices = @transform_2, window_bounds = array<i64: 8, 8>}, {pipeline_mode = #tpu.pipeline_mode<synchronous>, transform_indices = @transform_3, window_bounds = array<i64: 8, 8>}]} {
    %c0 = arith.constant 0 : index
    %c0_0 = arith.constant 0 : index
    %0 = vector.load %arg1[%c0, %c0_0] : memref<8x32xf32, #tpu.memory_space<vmem>>, vector<8x32xf32>
    %c0_1 = arith.constant 0 : index
    %c0_2 = arith.constant 0 : index
    %1 = vector.load %arg2[%c0_1, %c0_2] : memref<8x32xf32, #tpu.memory_space<vmem>>, vector<8x32xf32>
    %2 = arith.mulf %0, %0 : vector<8x32xf32>
    %cst = arith.constant dense<0.000000e+00> : vector<8xf32>
    %3 = vector.multi_reduction <add>, %2, %cst [1] : vector<8x32xf32> to vector<8xf32>
    %4 = vector.shape_cast %3 : vector<8xf32> to vector<8x1xf32>
    %cst_3 = arith.constant 1.000000e-24 : f32
    %5 = vector.broadcast %cst_3 : f32 to vector<8x1xf32>
    %6 = arith.maximumf %4, %5 : vector<8x1xf32>
    %7 = math.rsqrt %6 : vector<8x1xf32>
    %8 = vector.broadcast %7 : vector<8x1xf32> to vector<8x32xf32>
    %9 = arith.mulf %0, %8 : vector<8x32xf32>
    %10 = arith.mulf %1, %1 : vector<8x32xf32>
    %cst_4 = arith.constant dense<0.000000e+00> : vector<8xf32>
    %11 = vector.multi_reduction <add>, %10, %cst_4 [1] : vector<8x32xf32> to vector<8xf32>
    %12 = vector.shape_cast %11 : vector<8xf32> to vector<8x1xf32>
    %cst_5 = arith.constant 1.000000e-24 : f32
    %13 = vector.broadcast %cst_5 : f32 to vector<8x1xf32>
    %14 = arith.maximumf %12, %13 : vector<8x1xf32>
    %15 = math.rsqrt %14 : vector<8x1xf32>
    %16 = vector.broadcast %15 : vector<8x1xf32> to vector<8x32xf32>
    %17 = arith.mulf %1, %16 : vector<8x32xf32>
    "tpu.trace_start"() <{level = 10 : i32, message = "nd,md->nm"}> : () -> ()
    %cst_6 = arith.constant dense<0.000000e+00> : vector<8x8xf32>
    %18 = tpu.matmul %9, %9, %cst_6 {dimension_numbers = #tpu.dot_dimension_numbers<[1], [1], [0], [0], [0, 0, 1, 0], [], []>} : vector<8x32xf32>, vector<8x32xf32>, vector<8x8xf32> -> vector<8x8xf32>
    "tpu.trace_stop"() : () -> ()
    %c0_7 = arith.constant 0 : index
    %c0_8 = arith.constant 0 : index
    %19 = vector.load %arg3[%c0_7, %c0_8] : memref<8x8xf32, #tpu.memory_space<vmem>>, vector<8x8xf32>
    tpu.vector_store %arg3[%c0_7, %c0_8], %18 {strides = array<i32>} : memref<8x8xf32, #tpu.memory_space<vmem>>, vector<8x8xf32>,
    "tpu.trace_start"() <{level = 10 : i32, message = "nd,md->nm"}> : () -> ()
    %cst_9 = arith.constant dense<0.000000e+00> : vector<8x8xf32>
    %20 = tpu.matmul %17, %17, %cst_9 {dimension_numbers = #tpu.dot_dimension_numbers<[1], [1], [0], [0], [0, 0, 1, 0], [], []>} : vector<8x32xf32>, vector<8x32xf32>, vector<8x8xf32> -> vector<8x8xf32>
    "tpu.trace_stop"() : () -> ()
    %c0_10 = arith.constant 0 : index
    %c0_11 = arith.constant 0 : index
    %21 = vector.load %arg4[%c0_10, %c0_11] : memref<8x8xf32, #tpu.memory_space<vmem>>, vector<8x8xf32>
    tpu.vector_store %arg4[%c0_10, %c0_11], %20 {strides = array<i32>} : memref<8x8xf32, #tpu.memory_space<vmem>>, vector<8x8xf32>,
    return
  }
  func.func @transform_0(%arg0: i32) -> (i32, i32) {
    %c0_i32 = arith.constant 0 : i32
    %c0_i32_0 = arith.constant 0 : i32
    %c0_i32_1 = arith.constant 0 : i32
    return %c0_i32, %c0_i32_0 : i32, i32
  }
  func.func @transform_1(%arg0: i32) -> (i32, i32) {
    %c0_i32 = arith.constant 0 : i32
    %c0_i32_0 = arith.constant 0 : i32
    %c0_i32_1 = arith.constant 0 : i32
    return %c0_i32, %c0_i32_0 : i32, i32
  }
  func.func @transform_2(%arg0: i32) -> (i32, i32) {
    %c0_i32 = arith.constant 0 : i32
    %c0_i32_0 = arith.constant 0 : i32
    %c0_i32_1 = arith.constant 0 : i32
    return %c0_i32, %c0_i32_0 : i32, i32
  }
  func.func @transform_3(%arg0: i32) -> (i32, i32) {
    %c0_i32 = arith.constant 0 : i32
    %c0_i32_0 = arith.constant 0 : i32
    %c0_i32_1 = arith.constant 0 : i32
    return %c0_i32, %c0_i32_0 : i32, i32
  }
}

</mosaic_0001>

<bundles_post_ra>
// kernel: tpu_custom_call.1
= control target key start
LH: loop header
LB: loop body
LE: loop exit
PB: predicated region body
PF: predicated region fallthrough
CT: control target
= control target key end

     0   :  { %9 = vsyncpa [#allocation3], 0  ;;  %s441_s0 = inlined_call_operand.hbm [shape: f32[8,32], index: 0, kind: input, shape index: {}]   ;;  %s442_s1 = inlined_call_operand.hbm [shape: f32[8,32], index: 1, kind: input, shape index: {}]   ;;  %s443_s2 = inlined_call_operand.hbm [shape: f32[8,8], index: 2, kind: output, shape index: {0}]   ;;  %s444_s3 = inlined_call_operand.hbm [shape: f32[8,8], index: 3, kind: output, shape index: {1}]  }
   0x1   :  { %10 = vsyncpa [#allocation6], 0 }
   0x2   :  { %11 = vsyncpa [#allocation4], 0 }
   0x3   :  { %12 = vsyncpa [#allocation9], 0  ;;  %s359_s12 = smov [#allocation2]   ;;  %s360_s14 = smov [#allocation5]  }
   0x4   :  { %s19_s13 = sshll.u32 %s359_s12, 4  ;;  %s29_s15 = sshll.u32 %s360_s14, 4  ;;  %s20_s13 = int_to_ptr.vmem [resolvable:$true] %s19_s13  ;;  %s30_s15 = int_to_ptr.vmem [resolvable:$true] %s29_s15 }
   0x5   :  { %s263_s18 = scalar_lea.hbm %s441_s0, 128 }
   0x6   :  { %p264_p0 = scmp.ne.s32.totalorder %s441_s0, %s263_s18  ;;  %p267_p1 = scmp.lt.u32.totalorder %s263_s18, %s441_s0 }
   0x8   :  { %p269_p2 = pnand %p267_p1, %p264_p0 }
   0xa   :  { %272 = shalt.err (!%p269_p2)
}
   0xb   :  { %s273_s23 = scalar_lea.vmem %s20_s13, 128  ;;  %p278_p4 = scmp.lt.s32.totalorder %s20_s13, %s20_s13 }
   0xc   :  { %p274_p3 = scmp.ne.s32.totalorder %s20_s13, %s273_s23  ;;  %p279_p5 = scmp.lt.s32.totalorder %s273_s23, %s273_s23 }
   0xe   :  { %p280_p6 = por %p279_p5, %p278_p4 }
  0x10   :  { %p281_p7 = pnand %p280_p6, %p274_p3 }
  0x12   :  { %284 = shalt.err (!%p281_p7)
}
  0x13   :  { %22 = dma.hbm_to_vmem [thread:$0]  %s441_s0, 128, %s20_s13, [#allocation3]  }
  0x14   :  { %s285_s28 = scalar_lea.hbm %s442_s1, 128 }
  0x15   :  { %p286_p8 = scmp.ne.s32.totalorder %s442_s1, %s285_s28  ;;  %p289_p9 = scmp.lt.u32.totalorder %s285_s28, %s442_s1 }
  0x17   :  { %p291_p10 = pnand %p289_p9, %p286_p8 }
  0x19   :  { %294 = shalt.err (!%p291_p10)
}
  0x1a   :  { %s295_s6 = scalar_lea.vmem %s30_s15, 128  ;;  %p300_p12 = scmp.lt.s32.totalorder %s30_s15, %s30_s15 }
  0x1b   :  { %p296_p11 = scmp.ne.s32.totalorder %s30_s15, %s295_s6  ;;  %p301_p13 = scmp.lt.s32.totalorder %s295_s6, %s295_s6 }
  0x1d   :  { %p302_p0 = por %p301_p13, %p300_p12 }
  0x1f   :  { %p303_p1 = pnand %p302_p0, %p296_p11 }
  0x21   :  { %306 = shalt.err (!%p303_p1)
}
  0x22   :  { %32 = dma.hbm_to_vmem [thread:$0]  %s442_s1, 128, %s30_s15, [#allocation6]  }
  0x23   :  { %351 = dma.done.wait [#allocation3], 128  }
  0x24   :  { %352 = vsyncadd [#allocation3], 4294967168 }
  0x25   :  { %353 = dma.done.wait [#allocation6], 128  }
  0x26   :  { %354 = vsyncadd [#allocation6], 4294967168  ;;  %v39_v0 = vld [vmem:[#allocation2] sm:$0xff]  ;;  %vm42_vm0 = vcmask 261120   ;;  %v40_v1 = vld [vmem:[#allocation5] sm:$0xff]  ;;  %v361_v6 = vmov 0.0  }
  0x27   :  { %v41_v2 = vmul.f32 %v39_v0, %v39_v0  ;;  %v49_v3 = vmul.f32 %v40_v1, %v40_v1  ;;  %243 = vmatprep.subr.mxu0 %v361_v6  ;;  %248 = vmatprep.subr.mxu1 %v361_v6  ;;  %vm362_vm1 = vmmov 0   ;;  %s363_s1 = smov [#allocation7]   ;;  %vm129_vm2 = vcmask 64512   ;;  %s364_s9 = smov [#allocation8]  }
  0x28   :  { %245 = vmatprep.mubr.msk.f32.mxu0 %vm362_vm1, %v361_v6  ;;  %250 = vmatprep.mubr.msk.f32.mxu1 %vm362_vm1, %v361_v6  ;;  %s211_s8 = sshll.u32 %s363_s1, 4  ;;  %s221_s10 = sshll.u32 %s364_s9, 4  ;;  %s212_s8 = int_to_ptr.vmem [resolvable:$true] %s211_s8  ;;  %s222_s10 = int_to_ptr.vmem [resolvable:$true] %s221_s10 }
  0x29   :  { %v43_v4 = vsel %vm42_vm0, %v41_v2, 0.0  ;;  %v50_v5 = vsel %vm42_vm0, %v49_v3, 0.0  ;;  %s307_s11 = scalar_lea.vmem %s212_s8, 128  ;;  %p312_p3 = scmp.lt.s32.totalorder %s212_s8, %s212_s8 }
  0x2a   :  { %44 = vadd.xlane.f32.xlu0 %v43_v4  ;;  %p308_p2 = scmp.ne.s32.totalorder %s212_s8, %s307_s11  ;;  %p313_p4 = scmp.lt.s32.totalorder %s307_s11, %s307_s11 }
  0x2c   :  { %p314_p5 = por %p313_p4, %p312_p3 }
  0x2e   :  { %51 = vadd.xlane.f32.xlu0 %v50_v5  ;;  %p315_p6 = pnand %p314_p5, %p308_p2 }
  0xb7   :  { %v45_v7 = vpop.xlane.xlu0 %44 }
  0xb8   :  { %v46_v8 = vmax.f32 %v45_v7, 1e-24 }
  0xba   :  { %259 = vrsqrt.f32 %v46_v8 }
  0xbb   :  { %v52_v9 = vpop.xlane.xlu0 %51 }
  0xbc   :  { %v53_v10 = vmax.f32 %v52_v9, 1e-24 }
  0xbe   :  { %261 = vrsqrt.f32 %v53_v10 }
  0xc4   :  { %v260_v11 = vpop.eup %259 }
  0xc5   :  { %v48_v12 = vmul.f32 %v260_v11, %v39_v0 }
  0xc7   :  { %244 = vmatpush3.xpose.msk.msra.mxu0 %vm42_vm0, %v48_v12 }
  0xc8   :  { %v262_v13 = vpop.eup %261 }
  0xc9   :  { %v55_v14 = vmul.f32 %v262_v13, %v40_v1 }
  0xca   :  { %246 = vmatmul.mubr.msk.f32.vlgmr.msra.gmra.mrb[0].mxu0 %vm42_vm0, %v48_v12 }
  0xcb   :  { %249 = vmatpush3.xpose.msk.msra.mxu1 %vm42_vm0, %v55_v14 }
  0xce   :  { %251 = vmatmul.mubr.msk.f32.vlgmr.msra.gmra.mrb[0].mxu1 %vm42_vm0, %v55_v14 }
 0x19d   :  { %v125_v15 = vpop.f32.mrb[0].mxu0 }
 0x19e   :  { %v247_v16 = vpop.f32.mrb[1].mxu0  ;;  %130 = vst.msk [vmem:[#allocation7] sm:$0xff] %vm129_vm2, %v125_v15 }
 0x19f   :  { %318 = shalt.err (!%p315_p6)
}
 0x1a0   :  { %s319_s14 = scalar_lea.hbm %s443_s2, 128 }
 0x1a1   :  { %p320_p7 = scmp.ne.s32.totalorder %s443_s2, %s319_s14  ;;  %p323_p8 = scmp.lt.u32.totalorder %s319_s14, %s443_s2 }
 0x1a3   :  { %p325_p9 = pnand %p323_p8, %p320_p7 }
 0x1a5   :  { %328 = shalt.err (!%p325_p9)
}
 0x1a6   :  { %214 = dma.vmem_to_hbm [thread:$0]  %s212_s8, 128, %s443_s2, [#allocation4]   ;;  %v200_v17 = vpop.f32.mrb[0].mxu1 }
 0x1a7   :  { %v252_v18 = vpop.f32.mrb[1].mxu1  ;;  %204 = vst.msk [vmem:[#allocation8] sm:$0xff] %vm129_vm2, %v200_v17  ;;  %s329_s21 = scalar_lea.vmem %s222_s10, 128  ;;  %p334_p11 = scmp.lt.s32.totalorder %s222_s10, %s222_s10 }
 0x1a8   :  { %p330_p10 = scmp.ne.s32.totalorder %s222_s10, %s329_s21  ;;  %p335_p12 = scmp.lt.s32.totalorder %s329_s21, %s329_s21 }
 0x1aa   :  { %p336_p13 = por %p335_p12, %p334_p11 }
 0x1ac   :  { %p337_p0 = pnand %p336_p13, %p330_p10 }
 0x1ae   :  { %340 = shalt.err (!%p337_p0)
}
 0x1af   :  { %s341_s24 = scalar_lea.hbm %s444_s3, 128 }
 0x1b0   :  { %p342_p1 = scmp.ne.s32.totalorder %s444_s3, %s341_s24  ;;  %p345_p2 = scmp.lt.u32.totalorder %s341_s24, %s444_s3 }
 0x1b2   :  { %p347_p3 = pnand %p345_p2, %p342_p1 }
 0x1b4   :  { %350 = shalt.err (!%p347_p3)
}
 0x1b5   :  { %224 = dma.vmem_to_hbm [thread:$0]  %s222_s10, 128, %s444_s3, [#allocation9]  }
 0x1b6   :  { %355 = dma.done.wait [#allocation4], 128  }
 0x1b7   :  { %356 = vsyncadd [#allocation4], 4294967168 }
 0x1b8   :  { %357 = dma.done.wait [#allocation9], 128  }
 0x1b9   :  { %358 = vsyncadd [#allocation9], 4294967168 }
 0x1ba   :  { %231 = vsyncpa [#allocation3], 1 }
 0x1bb   :  { %232 = vsyncpa [#allocation6], 1 }
 0x1bc   :  { %233 = vsyncpa [#allocation4], 1 }
 0x1bd   :  { %234 = vsyncpa [#allocation9], 1 }

</bundles_post_ra>
